<compile_context>
chip_gen: v6e
topology: v6e:2x2x1
jax: 0.10.0
libtpu: 0.0.40
codegen_flags: <defaults>
</compile_context>

<pallas_src>
import functools
import math

import jax
import jax.numpy as jnp
from jax import lax
from jax.experimental import pallas as pl
from jax.experimental.pallas import tpu as pltpu


def _round_up(x, m):
    return (x + m - 1) // m * m


def _vmem_capacity_bytes():
    """Per-generation VMEM capacity (v5e/v6e: 128 MiB, v7x: 64 MiB/TC); conservative fallback."""
    try:
        cap = getattr(pltpu.get_tpu_info(), "vmem_capacity_bytes", None)
        if cap:
            return int(cap)
    except Exception:
        pass
    return 64 << 20


def _default_block_seq():
    """Sequence-block size: 128 on v5e (4x128 MXU, single vst slot), 256 elsewhere."""
    try:
        kind = jax.devices()[0].device_kind.lower()
        if "v5 lite" in kind or "v5e" in kind or "v5lite" in kind:
            return 128
    except Exception:
        pass
    return 256


def _choose_seq_block(S, block_seq):
    """Pick TS so that TS == S (full-extent block) or TS | S with TS % 8 == 0 (no output slice).
    Falls back to padding S up to a multiple of block_seq (post-kernel slice) otherwise."""
    if S <= block_seq:
        return S, S
    for ts in range(block_seq - block_seq % 8, 7, -8):
        if S % ts == 0:
            return ts, S
    return block_seq, _round_up(S, block_seq)


# ----------------------------------------------------------------------------------------------
# Kernels
# ----------------------------------------------------------------------------------------------

def _emb_onehot_kernel(ids_ref, emb_ref, pe_ref, out_ref, *, scale, vocab_padded):
    # ids_ref: (1, TS, 1) int32   token ids for this (seq-block, batch) grid point (sublane axis)
    # emb_ref: (V_pad, D)         full table, VMEM-resident (constant index_map, revisited)
    # pe_ref:  (TS, D)            contiguous positional-encoding rows for this sequence block
    # out_ref: (1, TS, D)
    ids_col = ids_ref[0]                                                # (TS, 1)
    ts = ids_col.shape[0]
    iota_v = lax.broadcasted_iota(jnp.int32, (ts, vocab_padded), 1)     # (TS, V_pad)
    onehot = (iota_v == ids_col).astype(emb_ref.dtype)                  # (TS, V_pad), exact 0/1
    tok = jnp.dot(onehot, emb_ref[...],                                 # canonical (M,K)x(K,N)
                  preferred_element_type=jnp.float32)                   # (TS, D) f32 accumulate
    result = tok * scale + pe_ref[...].astype(jnp.float32)
    out_ref[...] = result[None].astype(out_ref.dtype)                   # (1, TS, D)


def _emb_gather_kernel(ids_smem, emb_hbm, pe_ref, out_ref, rows, sem, *, scale, seq_block):
    # ids_smem: (B, S_pad) int32 in SMEM (scalar-prefetched) — drives the row DMAs
    # emb_hbm:  (V, D)  left in HBM (memory_space=pl.ANY)
    # pe_ref:   (TS, D) VMEM; out_ref: (1, TS, D) VMEM
    # rows:     (TS, D) VMEM scratch; sem: DMA semaphore
    j = pl.program_id(0)
    b = pl.program_id(1)
    base = j * seq_block

    @pl.loop(0, seq_block)
    def _issue(t):
        tok = ids_smem[b, base + t]
        pltpu.make_async_copy(emb_hbm.at[pl.ds(tok, 1)],
                              rows.at[pl.ds(t, 1)], sem).start()

    @pl.loop(0, seq_block)
    def _wait(t):
        # All row copies have identical size; wait once per issued copy on the shared semaphore.
        pltpu.make_async_copy(emb_hbm.at[pl.ds(0, 1)],
                              rows.at[pl.ds(0, 1)], sem).wait()

    result = rows[...].astype(jnp.float32) * scale + pe_ref[...].astype(jnp.float32)
    out_ref[...] = result[None].astype(out_ref.dtype)


# ----------------------------------------------------------------------------------------------
# Wrapper (table prep hoisted to init time)
# ----------------------------------------------------------------------------------------------

def make_embeddings(emb_table, pe, *, block_seq=None, out_dtype=jnp.float32,
                    onehot_vocab_limit=2048):
    """Returns forward(ids) -> emb_table[ids] * sqrt(D) + pe[:S]  (eval-mode Embeddings).

    emb_table: (V, D) float32 or bfloat16
    pe:        (max_len, D)
    Out-of-range ids: the one-hot path yields zero rows; the DMA path would OOB (as in PyTorch,
    invalid indices are not supported).
    """
    V, D = emb_table.shape
    max_len, d2 = pe.shape
    assert d2 == D
    scale = math.sqrt(D)
    if block_seq is None:
        block_seq = _default_block_seq()

    emb_b = jnp.dtype(emb_table.dtype).itemsize
    pe_b = jnp.dtype(pe.dtype).itemsize
    out_b = jnp.dtype(out_dtype).itemsize
    vmem_cap = _vmem_capacity_bytes()

    V_pad = _round_up(V, 256)            # 256-aligned K for the v6e/v7x 256x256 MXU tiles
    table_bytes = V_pad * D * emb_b
    # Budget with the table counted twice so even the double-buffered fallback fits.
    onehot_need = (2 * table_bytes
                   + block_seq * V_pad * emb_b             # one-hot matmul LHS intermediate
                   + block_seq * D * 4                     # f32 accumulator
                   + 2 * block_seq * 128 * 4               # ids tiles (lane-padded), 2 buffers
                   + 2 * block_seq * D * (pe_b + out_b)    # pe / out tiles, double-buffered
                   + (8 << 20))                            # headroom / compiler scratch
    use_onehot = (V_pad <= onehot_vocab_limit) and (onehot_need <= int(0.75 * vmem_cap))

    # ---- one-time table preparation (hoisted out of the per-call path) ----
    if use_onehot and V_pad != V:
        emb_prepared = jnp.zeros((V_pad, D), emb_table.dtype).at[:V, :].set(emb_table)
    else:
        emb_prepared = emb_table            # gather path: table used as-is, stays in HBM

    state = {"single_buffer_table": True}   # drop to default buffering if Buffered(1) unsupported

    def forward(ids):
        B, S = ids.shape
        assert S <= max_len, "sequence length exceeds positional-encoding table"
        TS, S_pad = _choose_seq_block(S, block_seq)
        num_blocks = S_pad // TS

        ids32 = ids.astype(jnp.int32)
        if S_pad != S:
            ids32 = jnp.zeros((B, S_pad), jnp.int32).at[:, :S].set(ids32)

        # PE operand: pass the full table (no copy) when the block shape allows it.
        if TS % 8 == 0 and S_pad <= max_len:
            pe_arg = pe
        elif S_pad <= max_len:
            pe_arg = pe[:S_pad]
        else:
            pe_arg = jnp.zeros((S_pad, D), pe.dtype).at[:max_len, :].set(pe)

        dims = ("parallel", "parallel")
        out_shape = jax.ShapeDtypeStruct((B, S_pad, D), out_dtype)

        if use_onehot:
            kernel = functools.partial(_emb_onehot_kernel, scale=scale, vocab_padded=V_pad)
            vmem_limit = int(min(max(
                2 * table_bytes + TS * V_pad * emb_b + TS * D * 4
                + 2 * TS * 128 * 4 + 2 * TS * D * (pe_b + out_b) + (8 << 20),
                32 << 20), int(0.9 * vmem_cap)))

            def run(single_buffer):
                if single_buffer:
                    emb_spec = pl.BlockSpec((V_pad, D), lambda j, b: (0, 0),
                                            pipeline_mode=pl.Buffered(1))
                else:
                    emb_spec = pl.BlockSpec((V_pad, D), lambda j, b: (0, 0))
                return pl.pallas_call(
                    kernel,
                    grid_spec=pltpu.PrefetchScalarGridSpec(
                        num_scalar_prefetch=0,
                        grid=(num_blocks, B),                 # seq outer -> PE revisited over b
                        in_specs=[
                            pl.BlockSpec((1, TS, 1), lambda j, b: (b, j, 0)),   # ids (sublanes)
                            emb_spec,                                           # resident table
                            pl.BlockSpec((TS, D), lambda j, b: (j, 0)),         # PE rows
                        ],
                        out_specs=pl.BlockSpec((1, TS, D), lambda j, b: (b, j, 0)),
                    ),
                    out_shape=out_shape,
                    compiler_params=pltpu.CompilerParams(
                        dimension_semantics=dims, vmem_limit_bytes=vmem_limit),
                )(ids32[..., None], emb_prepared, pe_arg)

            if state["single_buffer_table"]:
                try:
                    out = run(True)
                except Exception:
                    state["single_buffer_table"] = False
                    out = run(False)
            else:
                out = run(False)
        else:
            kernel = functools.partial(_emb_gather_kernel, scale=scale, seq_block=TS)
            vmem_limit = int(min(max(
                TS * D * emb_b + 2 * TS * D * (pe_b + out_b) + (8 << 20),
                32 << 20), int(0.9 * vmem_cap)))
            out = pl.pallas_call(
                kernel,
                grid_spec=pltpu.PrefetchScalarGridSpec(
                    num_scalar_prefetch=1,                    # ids -> SMEM, drives row DMAs
                    grid=(num_blocks, B),
                    in_specs=[
                        pl.BlockSpec(memory_space=pl.ANY),                     # table in HBM
                        pl.BlockSpec((TS, D), lambda j, b, ids: (j, 0)),       # PE rows
                    ],
                    out_specs=pl.BlockSpec((1, TS, D), lambda j, b, ids: (b, j, 0)),
                    scratch_shapes=[
                        pltpu.VMEM((TS, D), emb_prepared.dtype),
                        pltpu.SemaphoreType.DMA(()),
                    ],
                ),
                out_shape=out_shape,
                compiler_params=pltpu.CompilerParams(
                    dimension_semantics=dims, vmem_limit_bytes=vmem_limit),
            )(ids32, emb_prepared, pe_arg)

        if S_pad != S:
            out = out[:, :S, :]
        return out

    return forward


def make_positional_encoding(max_len, d_model):
    position = jnp.arange(max_len, dtype=jnp.float32)[:, None]               # (max_len, 1)
    div_term = jnp.exp(jnp.arange(0, d_model, 2, dtype=jnp.float32)
                       * -(math.log(10000.0) / d_model))                     # (d_model/2,)
    pe = jnp.zeros((max_len, d_model), dtype=jnp.float32)
    pe = pe.at[:, 0::2].set(jnp.sin(position * div_term))
    pe = pe.at[:, 1::2].set(jnp.cos(position * div_term))
    return pe


if __name__ == "__main__":
    key = jax.random.PRNGKey(0)
    k1, k2, k3, k4 = jax.random.split(key, 4)

    # --- Test 1: module-spec shapes, small vocab -> MXU one-hot path ---
    vocab_size, d_model, max_len = 11, 32, 64
    B, S = 2, 8
    ids = jax.random.randint(k1, (B, S), 0, vocab_size, dtype=jnp.int32)
    emb_table = jax.random.normal(k2, (vocab_size, d_model), dtype=jnp.float32)
    pe = make_positional_encoding(max_len, d_model)
    ref = emb_table[ids] * math.sqrt(d_model) + pe[None, :S, :]

    fwd = make_embeddings(emb_table, pe)
    out = jax.block_until_ready(fwd(ids))
    assert out.shape == (B, S, d_model)
    assert jnp.allclose(out, ref, atol=1e-5, rtol=1e-5)

    # bf16 tables in HBM (halved read traffic, bf16 MXU); f32 accumulate in-kernel.
    fwd_bf16 = make_embeddings(emb_table.astype(jnp.bfloat16), pe.astype(jnp.bfloat16))
    out_bf16 = jax.block_until_ready(fwd_bf16(ids))
    assert jnp.allclose(out_bf16, ref, atol=1e-1, rtol=2e-2)

    # --- Test 2: larger vocab -> scalar-prefetch DMA row-gather path (table stays in HBM) ---
    vocab2, d2, max_len2 = 4096, 256, 512
    B2, S2 = 2, 128
    ids2 = jax.random.randint(k3, (B2, S2), 0, vocab2, dtype=jnp.int32)
    emb2 = jax.random.normal(k4, (vocab2, d2), dtype=jnp.float32)
    pe2 = make_positional_encoding(max_len2, d2)
    ref2 = emb2[ids2] * math.sqrt(d2) + pe2[None, :S2, :]

    fwd2 = make_embeddings(emb2, pe2)
    out2 = jax.block_until_ready(fwd2(ids2))
    assert out2.shape == (B2, S2, d2)
    assert jnp.allclose(out2, ref2, atol=1e-5, rtol=1e-5)

    print("KERNEL_OK")
</pallas_src>

<mosaic_0001>
module attributes {stable_mosaic.version = 11 : i64} {
  func.func @_emb_onehot_kernel(%arg0: i32, %arg1: i32, %arg2: memref<1x8x1xi32, #tpu.memory_space<vmem>>, %arg3: memref<256x32xf32, #tpu.memory_space<vmem>>, %arg4: memref<8x32xf32, #tpu.memory_space<vmem>>, %arg5: memref<1x8x32xf32, #tpu.memory_space<vmem>>) attributes {dimension_semantics = [#tpu.dimension_semantics<parallel>, #tpu.dimension_semantics<parallel>], iteration_bounds = array<i64: 1, 2>, scalar_prefetch = 0 : i64, scratch_operands = 0 : i64, tpu.core_type = #tpu.core_type<tc>, window_params = [{transform_indices = @transform_0, window_bounds = array<i64: 1, 8, 1>}, {pipeline_mode = #tpu.pipeline_mode<synchronous>, transform_indices = @transform_1, window_bounds = array<i64: 256, 32>}, {transform_indices = @transform_2, window_bounds = array<i64: 8, 32>}, {transform_indices = @transform_3, window_bounds = array<i64: 1, 8, 32>}]} {
    %c0 = arith.constant 0 : index
    %c0_0 = arith.constant 0 : index
    %c0_1 = arith.constant 0 : index
    %0 = vector.load %arg2[%c0, %c0_0, %c0_1] : memref<1x8x1xi32, #tpu.memory_space<vmem>>, vector<1x8x1xi32>
    %1 = vector.shape_cast %0 : vector<1x8x1xi32> to vector<8x1xi32>
    %2 = tpu.iota {dimensions = array<i32: 1>} : vector<8x256xi32>
    %3 = vector.broadcast %1 : vector<8x1xi32> to vector<8x256xi32>
    %4 = arith.cmpi eq, %2, %3 : vector<8x256xi32>
    %5 = arith.extui %4 : vector<8x256xi1> to vector<8x256xi32>
    %6 = arith.sitofp %5 : vector<8x256xi32> to vector<8x256xf32>
    %c0_2 = arith.constant 0 : index
    %c0_3 = arith.constant 0 : index
    %7 = vector.load %arg3[%c0_2, %c0_3] : memref<256x32xf32, #tpu.memory_space<vmem>>, vector<256x32xf32>
    %cst = arith.constant dense<0.000000e+00> : vector<8x32xf32>
    %8 = tpu.matmul %6, %7, %cst {dimension_numbers = #tpu.dot_dimension_numbers<[1], [0], [0], [1], [0, 0, 1, 1], [], []>} : vector<8x256xf32>, vector<256x32xf32>, vector<8x32xf32> -> vector<8x32xf32>
    %cst_4 = arith.constant 5.65685415 : f32
    %9 = vector.broadcast %cst_4 : f32 to vector<8x32xf32>
    %10 = arith.mulf %8, %9 : vector<8x32xf32>
    %c0_5 = arith.constant 0 : index
    %c0_6 = arith.constant 0 : index
    %11 = vector.load %arg4[%c0_5, %c0_6] : memref<8x32xf32, #tpu.memory_space<vmem>>, vector<8x32xf32>
    %12 = arith.addf %10, %11 : vector<8x32xf32>
    %13 = vector.shape_cast %12 : vector<8x32xf32> to vector<1x8x32xf32>
    %c0_7 = arith.constant 0 : index
    %c0_8 = arith.constant 0 : index
    %c0_9 = arith.constant 0 : index
    %14 = vector.load %arg5[%c0_7, %c0_8, %c0_9] : memref<1x8x32xf32, #tpu.memory_space<vmem>>, vector<1x8x32xf32>
    tpu.vector_store %arg5[%c0_7, %c0_8, %c0_9], %13 {strides = array<i32>} : memref<1x8x32xf32, #tpu.memory_space<vmem>>, vector<1x8x32xf32>,
    return
  }
  func.func @transform_0(%arg0: i32, %arg1: i32) -> (i32, i32, i32) {
    %c0_i32 = arith.constant 0 : i32
    %c0_i32_0 = arith.constant 0 : i32
    return %arg1, %arg0, %c0_i32 : i32, i32, i32
  }
  func.func @transform_1(%arg0: i32, %arg1: i32) -> (i32, i32) {
    %c0_i32 = arith.constant 0 : i32
    %c0_i32_0 = arith.constant 0 : i32
    %c0_i32_1 = arith.constant 0 : i32
    return %c0_i32, %c0_i32_0 : i32, i32
  }
  func.func @transform_2(%arg0: i32, %arg1: i32) -> (i32, i32) {
    %c0_i32 = arith.constant 0 : i32
    %c0_i32_0 = arith.constant 0 : i32
    return %arg0, %c0_i32 : i32, i32
  }
  func.func @transform_3(%arg0: i32, %arg1: i32) -> (i32, i32, i32) {
    %c0_i32 = arith.constant 0 : i32
    %c0_i32_0 = arith.constant 0 : i32
    return %arg1, %arg0, %c0_i32 : i32, i32, i32
  }
}

module attributes {stable_mosaic.version = 11 : i64} {
  func.func @_emb_onehot_kernel(%arg0: i32, %arg1: i32, %arg2: memref<1x8x1xi32, #tpu.memory_space<vmem>>, %arg3: memref<256x32xf32, #tpu.memory_space<vmem>>, %arg4: memref<8x32xf32, #tpu.memory_space<vmem>>, %arg5: memref<1x8x32xf32, #tpu.memory_space<vmem>>) attributes {dimension_semantics = [#tpu.dimension_semantics<parallel>, #tpu.dimension_semantics<parallel>], iteration_bounds = array<i64: 1, 2>, scalar_prefetch = 0 : i64, scratch_operands = 0 : i64, tpu.core_type = #tpu.core_type<tc>, window_params = [{transform_indices = @transform_0, window_bounds = array<i64: 1, 8, 1>}, {pipeline_mode = #tpu.pipeline_mode<synchronous>, transform_indices = @transform_1, window_bounds = array<i64: 256, 32>}, {transform_indices = @transform_2, window_bounds = array<i64: 8, 32>}, {transform_indices = @transform_3, window_bounds = array<i64: 1, 8, 32>}]} {
    %c0 = arith.constant 0 : index
    %c0_0 = arith.constant 0 : index
    %c0_1 = arith.constant 0 : index
    %0 = vector.load %arg2[%c0, %c0_0, %c0_1] : memref<1x8x1xi32, #tpu.memory_space<vmem>>, vector<1x8x1xi32>
    %1 = vector.shape_cast %0 : vector<1x8x1xi32> to vector<8x1xi32>
    %2 = tpu.iota {dimensions = array<i32: 1>} : vector<8x256xi32>
    %3 = vector.broadcast %1 : vector<8x1xi32> to vector<8x256xi32>
    %4 = arith.cmpi eq, %2, %3 : vector<8x256xi32>
    %5 = arith.extui %4 : vector<8x256xi1> to vector<8x256xi32>
    %6 = arith.sitofp %5 : vector<8x256xi32> to vector<8x256xf32>
    %c0_2 = arith.constant 0 : index
    %c0_3 = arith.constant 0 : index
    %7 = vector.load %arg3[%c0_2, %c0_3] : memref<256x32xf32, #tpu.memory_space<vmem>>, vector<256x32xf32>
    %cst = arith.constant dense<0.000000e+00> : vector<8x32xf32>
    %8 = tpu.matmul %6, %7, %cst {dimension_numbers = #tpu.dot_dimension_numbers<[1], [0], [0], [1], [0, 0, 1, 1], [], []>} : vector<8x256xf32>, vector<256x32xf32>, vector<8x32xf32> -> vector<8x32xf32>
    %cst_4 = arith.constant 5.65685415 : f32
    %9 = vector.broadcast %cst_4 : f32 to vector<8x32xf32>
    %10 = arith.mulf %8, %9 : vector<8x32xf32>
    %c0_5 = arith.constant 0 : index
    %c0_6 = arith.constant 0 : index
    %11 = vector.load %arg4[%c0_5, %c0_6] : memref<8x32xf32, #tpu.memory_space<vmem>>, vector<8x32xf32>
    %12 = arith.addf %10, %11 : vector<8x32xf32>
    %13 = vector.shape_cast %12 : vector<8x32xf32> to vector<1x8x32xf32>
    %c0_7 = arith.constant 0 : index
    %c0_8 = arith.constant 0 : index
    %c0_9 = arith.constant 0 : index
    %14 = vector.load %arg5[%c0_7, %c0_8, %c0_9] : memref<1x8x32xf32, #tpu.memory_space<vmem>>, vector<1x8x32xf32>
    tpu.vector_store %arg5[%c0_7, %c0_8, %c0_9], %13 {strides = array<i32>} : memref<1x8x32xf32, #tpu.memory_space<vmem>>, vector<1x8x32xf32>,
    return
  }
  func.func @transform_0(%arg0: i32, %arg1: i32) -> (i32, i32, i32) {
    %c0_i32 = arith.constant 0 : i32
    %c0_i32_0 = arith.constant 0 : i32
    return %arg1, %arg0, %c0_i32 : i32, i32, i32
  }
  func.func @transform_1(%arg0: i32, %arg1: i32) -> (i32, i32) {
    %c0_i32 = arith.constant 0 : i32
    %c0_i32_0 = arith.constant 0 : i32
    %c0_i32_1 = arith.constant 0 : i32
    return %c0_i32, %c0_i32_0 : i32, i32
  }
  func.func @transform_2(%arg0: i32, %arg1: i32) -> (i32, i32) {
    %c0_i32 = arith.constant 0 : i32
    %c0_i32_0 = arith.constant 0 : i32
    return %arg0, %c0_i32 : i32, i32
  }
  func.func @transform_3(%arg0: i32, %arg1: i32) -> (i32, i32, i32) {
    %c0_i32 = arith.constant 0 : i32
    %c0_i32_0 = arith.constant 0 : i32
    return %arg1, %arg0, %c0_i32 : i32, i32, i32
  }
}

</mosaic_0001>

<bundles_post_ra>
// kernel: tpu_custom_call.1
= control target key start
LH: loop header
LB: loop body
LE: loop exit
PB: predicated region body
PF: predicated region fallthrough
CT: control target
= control target key end

     0   :  { %8 = vsyncpa [#allocation3], 0  ;;  %s837_s0 = inlined_call_operand.vmem [shape: s32[2,8,1], index: 0, kind: input, shape index: {}]   ;;  %s838_s1 = inlined_call_operand.vmem [shape: f32[256,32], index: 1, kind: input, shape index: {}]   ;;  %s839_s2 = inlined_call_operand.vmem [shape: f32[64,32], index: 2, kind: input, shape index: {}]   ;;  %s840_s3 = inlined_call_operand.hbm [shape: f32[2,8,32], index: 3, kind: output, shape index: {}]  }
   0x1   :  { %10 = vsyncpa [#allocation3 + $0x1], 0  ;;  %s639_s12 = smov 0   ;;  %s641_s13 = smov 0  }
   0x2   :  { %s643_s14 = smov 0   ;;  %s645_s15 = smov 0  }
   0x3   :  { %s647_s16 = smov 0   ;;  %s649_s17 = smov 0  }
   0x4 LB: > { %s429_s18 = sadd.s32 4294967295, %s614_s17   ;;  %s430_s19 = sadd.s32 4294967294, %s614_s17   ;;  %s614_s17 = sphi %s649_s17, %s16_s17   ;;  %s610_s16 = sphi %s647_s16, %s847_s16   ;;  %s606_s15 = sphi %s645_s15, %s846_s15   ;;  %s602_s14 = sphi %s643_s14, %s845_s14   ;;  %s598_s13 = sphi %s641_s13, %s844_s13   ;;  %s594_s12 = sphi %s639_s12, %s843_s12  }
   0x5   : > { %s25_s20 = sadd.s32 1, %s610_s16  ;;  %s112_s21 = sadd.s32 1, %s602_s14 }
   0x6   : > { %p26_p0 = scmp.ge.s32.totalorder %s25_s20, 2  ;;  %p122_p1 = scmp.ne.s32.totalorder %s602_s14, %s598_s13 }
   0x7   : > { %p123_p2 = scmp.eq.s32.totalorder %s429_s18, 1  ;;  %p128_p3 = scmp.ne.s32.totalorder %s598_s13, %s594_s12 }
   0x8   : > { %s849_s20 = smov (%p26_p0, %s25_s20), 0  ;;  %p129_p5 = scmp.eq.s32.totalorder %s430_s19, 1 }
   0x9   : > { %p679_p4 = por %p123_p2, %p122_p1  ;;  %s107_s23 = ssub.s32 %s610_s16, %s849_s20 }
   0xa   : > { %p434_p6 = scmp.ge.s32.totalorder %s614_s17, 1  ;;  %p110_p7 = scmp.eq.s32.totalorder %s107_s23, 0 }
   0xb   : > { %p686_p8 = por %p129_p5, %p128_p3  ;;  %p167_p9 = scmp.lt.s32.totalorder %s614_s17, 3 }
   0xc   : > { %s692_s25 = scalar_select %p110_p7, %s602_s14, %s112_s21  }
   0xd   : > { %p168_p10 = pnand %p434_p6, %p167_p9 }
   0xe   : > { %p197_p11 = scmp.lt.s32.totalorder (!%p168_p10), %s606_s15, 1  ;;  %s442_s4 = sshll.u32 (!%p168_p10), %s606_s15, 7 }
   0xf   : > { %171 = sbr.rel (%p168_p10) target bundleno = 365 (0x16d), region = 32  ;;  %s341_s9 = scalar_lea.hbm (!%p168_p10), %s840_s3, %s442_s4 }
  0x14   : > { %v252_v0 = vld [vmem:[%s838_s1 + $0xf8] sm:$0xff]  ;;  %v251_v2 = vld [vmem:[%s838_s1 + $0xf0] sm:$0xff]  ;;  %v616_v3 = vmov 0   ;;  %s198_s7 = scalar_select %p197_p11, %s606_s15, 1  ;;  %v250_v5 = vld [vmem:[%s838_s1 + $0xe8] sm:$0xff]  ;;  %v209_v34 = vlaneseq  ;;  %v617_v38 = vmov 1.0  }
  0x15   : > { %v236_v1 = vld [vmem:[%s838_s1 + $0x78] sm:$0xff]  ;;  %537 = vset.pattern.permute.xlu0 %v616_v3  ;;  %445 = vmatprep.subr.mxu0 %v252_v0  ;;  %v235_v4 = vld [vmem:[%s838_s1 + $0x70] sm:$0xff]  ;;  %v234_v6 = vld [vmem:[%s838_s1 + $0x68] sm:$0xff]  ;;  %vm326_vm2 = vcmask 261120  }
  0x16   : > { %446 = vmatpush3.msra.mxu0 %v236_v1  ;;  %s436_s18 = sshll.u32 %s198_s7, 3  ;;  %v249_v7 = vld [vmem:[%s838_s1 + $0xe0] sm:$0xff]  ;;  %v248_v10 = vld [vmem:[%s838_s1 + $0xd8] sm:$0xff]  ;;  %v247_v12 = vld [vmem:[%s838_s1 + $0xd0] sm:$0xff]  ;;  %v210_v35 = vand.u32 127, %v209_v34 }
  0x17   : > { %447 = vmatprep.subr.mxu0 %v251_v2  ;;  %s203_s27 = scalar_lea.vmem %s837_s0, %s436_s18  ;;  %v233_v8 = vld [vmem:[%s838_s1 + $0x60] sm:$0xff]  ;;  %v232_v11 = vld [vmem:[%s838_s1 + $0x58] sm:$0xff]  ;;  %v231_v13 = vld [vmem:[%s838_s1 + $0x50] sm:$0xff]  ;;  %s618_s18 = smov [#allocation2]  }
  0x18   : > { %448 = vmatpush3.msra.mxu0 %v235_v4  ;;  %v208_v9 = vld [vmem:[%s203_s27] sm:$0xff]  ;;  %v246_v14 = vld [vmem:[%s838_s1 + $0xc8] sm:$0xff]  ;;  %v244_v18 = vld [vmem:[%s838_s1 + $0xb8] sm:$0xff]  ;;  %v211_v36 = vadd.s32 128, %v210_v35  ;;  %s194_s27 = sand.u32 1, %s598_s13   ;;  %s542_s19 = sshll.u32 %s618_s18, 4  ;;  %s543_s19 = int_to_ptr.vmem [resolvable:$false] %s542_s19 }
  0x19   : > { %449 = vmatprep.subr.mxu0 %v250_v5  ;;  %213 = vperm.xlu0 %537, %v208_v9   ;;  %v230_v15 = vld [vmem:[%s838_s1 + $0x48] sm:$0xff]  ;;  %v245_v16 = vld [vmem:[%s838_s1 + $0xc0] sm:$0xff]  ;;  %v228_v19 = vld [vmem:[%s838_s1 + $0x38] sm:$0xff]  ;;  %s435_s28 = sshll.u32 %s194_s27, 3  ;;  %s329_s10 = scalar_lea.sflag [#allocation3], %s194_s27 }
  0x1a   : > { %450 = vmatpush3.msra.mxu0 %v234_v6  ;;  %v229_v17 = vld [vmem:[%s838_s1 + $0x40] sm:$0xff]  ;;  %v243_v20 = vld [vmem:[%s838_s1 + $0xb0] sm:$0xff]  ;;  %v242_v22 = vld [vmem:[%s838_s1 + $0xa8] sm:$0xff]  ;;  %s196_s5 = scalar_lea.vmem [#allocation2], %s435_s28  ;;  %s544_s15 = scalar_lea.vmem %s543_s19, 256 }
  0x1b   : > { %451 = vmatprep.subr.mxu0 %v249_v7  ;;  %v227_v21 = vld [vmem:[%s838_s1 + $0x30] sm:$0xff]  ;;  %v226_v23 = vld [vmem:[%s838_s1 + $0x28] sm:$0xff]  ;;  %v241_v24 = vld [vmem:[%s838_s1 + $0xa0] sm:$0xff]  ;;  %s343_s6 = sshll.u32 %s196_s5, 4  ;;  %s344_s6 = int_to_ptr.vmem [resolvable:$true] %s343_s6 }
  0x1c   : > { %452 = vmatpush3.msra.mxu0 %v233_v8  ;;  %v225_v25 = vld [vmem:[%s838_s1 + $0x20] sm:$0xff]  ;;  %v240_v26 = vld [vmem:[%s838_s1 + $0x98] sm:$0xff]  ;;  %v239_v28 = vld [vmem:[%s838_s1 + $0x90] sm:$0xff]  ;;  %s538_s11 = scalar_lea.vmem %s344_s6, 128  ;;  %p545_p1 = scmp.lt.s32.totalorder %s344_s6, %s543_s19 }
  0x1d   : > { %453 = vmatprep.subr.mxu0 %v248_v10  ;;  %v224_v27 = vld [vmem:[%s838_s1 + $0x18] sm:$0xff]  ;;  %v223_v29 = vld [vmem:[%s838_s1 + $0x10] sm:$0xff]  ;;  %v238_v30 = vld [vmem:[%s838_s1 + $0x88] sm:$0xff]  ;;  %p539_p12 = scmp.ne.s32.totalorder %s344_s6, %s538_s11  ;;  %p546_p2 = scmp.lt.s32.totalorder %s544_s15, %s538_s11 }
  0x1e   : > { %454 = vmatpush3.msra.mxu0 %v232_v11  ;;  %v222_v31 = vld [vmem:[%s838_s1 + $0x8] sm:$0xff]  ;;  %v237_v32 = vld [vmem:[%s838_s1 + $0x80] sm:$0xff] }
  0x1f   : > { %455 = vmatprep.subr.mxu0 %v247_v12  ;;  %v221_v33 = vld [vmem:[%s838_s1] sm:$0xff]  ;;  %p540_p13 = pnand %p539_p12, %p679_p4  ;;  %p547_p3 = por %p546_p2, %p545_p1 }
  0x20   : > { %456 = vmatpush3.msra.mxu0 %v231_v13  ;;  %v324_v42 = vld [vmem:[%s839_s2] sm:$0xff] }
  0x21   : > { %457 = vmatprep.subr.mxu0 %v246_v14  ;;  %p541_p0 = pneg %p540_p13 }
  0x22   : > { %458 = vmatpush3.msra.mxu0 %v230_v15 }
  0x23   : > { %459 = vmatprep.subr.mxu0 %v245_v16  ;;  %p548_p5 = pnand %p547_p3, %p541_p0 }
  0x24   : > { %460 = vmatpush3.msra.mxu0 %v229_v17 }
  0x25   : > { %461 = vmatprep.subr.mxu0 %v244_v18 }
  0x26   : > { %462 = vmatpush3.msra.mxu0 %v228_v19 }
  0x27   : > { %463 = vmatprep.subr.mxu0 %v243_v20 }
  0x28   : > { %464 = vmatpush3.msra.mxu0 %v227_v21 }
  0x29   : > { %465 = vmatprep.subr.mxu0 %v242_v22 }
  0x2a   : > { %466 = vmatpush3.msra.mxu0 %v226_v23 }
  0x2b   : > { %467 = vmatprep.subr.mxu0 %v241_v24 }
  0x2c   : > { %468 = vmatpush3.msra.mxu0 %v225_v25 }
  0x2d   : > { %469 = vmatprep.subr.mxu0 %v240_v26 }
  0x2e   : > { %470 = vmatpush3.msra.mxu0 %v224_v27 }
  0x2f   : > { %471 = vmatprep.subr.mxu0 %v239_v28 }
  0x30   : > { %472 = vmatpush3.msra.mxu0 %v223_v29 }
  0x31   : > { %473 = vmatprep.subr.mxu0 %v238_v30 }
  0x32   : > { %474 = vmatpush3.msra.mxu0 %v222_v31 }
  0x33   : > { %475 = vmatprep.subr.mxu0 %v237_v32 }
  0x34   : > { %476 = vmatpush3.msra.mxu0 %v221_v33 }
  0x94   : > { %v214_v37 = vpop.permute.xlu0 %213 }
  0x95   : > { %vm215_vm0 = vcmp.eq.s32.totalorder %v210_v35, %v214_v37  ;;  %vm216_vm1 = vcmp.eq.s32.totalorder %v211_v36, %v214_v37 }
  0x96   : > { %439 = vmatprep.mubr.msk.f32.mxu0 %vm216_vm1, %v617_v38 }
  0x97   : > { %440 = vmatmul.mubr.msk.f32.vlgmr.msra.gmra.mxu0 %vm215_vm0, %v617_v38 }
 0x157   : > { %v477_v39 = vpop.f32.mrf.mxu0 }
 0x159   : > { %v478_v40 = vpop.f32.mrf.mxu0 }
 0x15a   : > { %v479_v41 = vadd.f32 %v478_v40, %v477_v39 }
 0x15c   : > { %v323_v43 = vmul.f32 5.656854, %v479_v41 }
 0x15e   : > { %v325_v44 = vadd.f32 %v324_v42, %v323_v43 }
 0x160   : > { %327 = vst.msk [vmem:[%s196_s5] sm:$0xff] %vm326_vm2, %v325_v44 }
 0x161   : > { %551 = shalt.err (!%p548_p5)
}
 0x162   : > { %s552_s21 = scalar_lea.hbm %s341_s9, 128  ;;  %s556_s27 = scalar_lea.hbm %s840_s3, 256 }
 0x163   : > { %p553_p6 = scmp.ne.s32.totalorder %s341_s9, %s552_s21  ;;  %p557_p10 = scmp.lt.s32.totalorder %s341_s9, %s840_s3 }
 0x164   : > { %p558_p11 = scmp.lt.s32.totalorder %s556_s27, %s552_s21 }
 0x165   : > { %p554_p7 = pnand %p553_p6, %p679_p4 }
 0x166   : > { %p559_p12 = por %p558_p11, %p557_p10 }
 0x167   : > { %p555_p9 = pneg %p554_p7 }
 0x169   : > { %p560_p13 = pnand %p559_p12, %p555_p9 }
 0x16b   : > { %563 = shalt.err (!%p560_p13)
}
 0x16c   : > { %480 = dma.vmem_to_hbm [thread:$0]  (%p679_p4), %s344_s6, 128, %s341_s9, %s329_s10  }
 0x16d PF: > { %p486_p0 = scmp.ge.s32.totalorder %s614_s17, 2  ;;  %s355_s30 = sand.u32 1, %s594_s12  }
 0x16e   : > { %s356_s4 = scalar_lea.sflag [#allocation3], %s355_s30 }
 0x16f   : > { %p483_p1 = pnand %p486_p0, %p686_p8 }
 0x171   : > { %p484_p2 = pneg %p483_p1 }
 0x173   : > { %589 = dma.done.wait (%p484_p2), %s356_s4, 128  }
 0x174   : > { %591 = vsyncadd (%p484_p2), %s356_s4, 4294967168  ;;  %s16_s17 = sadd.s32 1, %s614_s17   ;;  %s843_s12 = smov %s598_s13 }
 0x175   : > { %p13_p3 = scmp.ge.s32.totalorder %s16_s17, 4   ;;  %s844_s13 = smov %s602_s14 }
 0x176   : > { %s845_s14 = smov %s692_s25  ;;  %s846_s15 = smov %s610_s16 }
 0x177   : > { %s847_s16 = smov %s849_s20  ;;  %15 = sbr.rel (!%p13_p3) target bundleno = 4 (0x4), region = 70 }
 0x17c   :  { %361 = vsyncpa [#allocation3], 1 }
 0x17d   :  { %363 = vsyncpa [#allocation3 + $0x1], 1 }

// kernel: tpu_custom_call.1
= control target key start
LH: loop header
LB: loop body
LE: loop exit
PB: predicated region body
PF: predicated region fallthrough
CT: control target
= control target key end

     0   :  { %8 = vsyncpa [#allocation3], 0  ;;  %s837_s0 = inlined_call_operand.vmem [shape: s32[2,8,1], index: 0, kind: input, shape index: {}]   ;;  %s838_s1 = inlined_call_operand.vmem [shape: f32[256,32], index: 1, kind: input, shape index: {}]   ;;  %s839_s2 = inlined_call_operand.vmem [shape: f32[64,32], index: 2, kind: input, shape index: {}]   ;;  %s840_s3 = inlined_call_operand.hbm [shape: f32[2,8,32], index: 3, kind: output, shape index: {}]  }
   0x1   :  { %10 = vsyncpa [#allocation3 + $0x1], 0  ;;  %s639_s12 = smov 0   ;;  %s641_s13 = smov 0  }
   0x2   :  { %s643_s14 = smov 0   ;;  %s645_s15 = smov 0  }
   0x3   :  { %s647_s16 = smov 0   ;;  %s649_s17 = smov 0  }
   0x4 LB: > { %s429_s18 = sadd.s32 4294967295, %s614_s17   ;;  %s430_s19 = sadd.s32 4294967294, %s614_s17   ;;  %s614_s17 = sphi %s649_s17, %s16_s17   ;;  %s610_s16 = sphi %s647_s16, %s847_s16   ;;  %s606_s15 = sphi %s645_s15, %s846_s15   ;;  %s602_s14 = sphi %s643_s14, %s845_s14   ;;  %s598_s13 = sphi %s641_s13, %s844_s13   ;;  %s594_s12 = sphi %s639_s12, %s843_s12  }
   0x5   : > { %s25_s20 = sadd.s32 1, %s610_s16  ;;  %s112_s21 = sadd.s32 1, %s602_s14 }
   0x6   : > { %p26_p0 = scmp.ge.s32.totalorder %s25_s20, 2  ;;  %p122_p1 = scmp.ne.s32.totalorder %s602_s14, %s598_s13 }
   0x7   : > { %p123_p2 = scmp.eq.s32.totalorder %s429_s18, 1  ;;  %p128_p3 = scmp.ne.s32.totalorder %s598_s13, %s594_s12 }
   0x8   : > { %s849_s20 = smov (%p26_p0, %s25_s20), 0  ;;  %p129_p5 = scmp.eq.s32.totalorder %s430_s19, 1 }
   0x9   : > { %p679_p4 = por %p123_p2, %p122_p1  ;;  %s107_s23 = ssub.s32 %s610_s16, %s849_s20 }
   0xa   : > { %p434_p6 = scmp.ge.s32.totalorder %s614_s17, 1  ;;  %p110_p7 = scmp.eq.s32.totalorder %s107_s23, 0 }
   0xb   : > { %p686_p8 = por %p129_p5, %p128_p3  ;;  %p167_p9 = scmp.lt.s32.totalorder %s614_s17, 3 }
   0xc   : > { %s692_s25 = scalar_select %p110_p7, %s602_s14, %s112_s21  }
   0xd   : > { %p168_p10 = pnand %p434_p6, %p167_p9 }
   0xe   : > { %p197_p11 = scmp.lt.s32.totalorder (!%p168_p10), %s606_s15, 1  ;;  %s442_s4 = sshll.u32 (!%p168_p10), %s606_s15, 7 }
   0xf   : > { %171 = sbr.rel (%p168_p10) target bundleno = 365 (0x16d), region = 32  ;;  %s341_s9 = scalar_lea.hbm (!%p168_p10), %s840_s3, %s442_s4 }
  0x14   : > { %v252_v0 = vld [vmem:[%s838_s1 + $0xf8] sm:$0xff]  ;;  %v251_v2 = vld [vmem:[%s838_s1 + $0xf0] sm:$0xff]  ;;  %v616_v3 = vmov 0   ;;  %s198_s7 = scalar_select %p197_p11, %s606_s15, 1  ;;  %v250_v5 = vld [vmem:[%s838_s1 + $0xe8] sm:$0xff]  ;;  %v209_v34 = vlaneseq  ;;  %v617_v38 = vmov 1.0  }
  0x15   : > { %v236_v1 = vld [vmem:[%s838_s1 + $0x78] sm:$0xff]  ;;  %537 = vset.pattern.permute.xlu0 %v616_v3  ;;  %445 = vmatprep.subr.mxu0 %v252_v0  ;;  %v235_v4 = vld [vmem:[%s838_s1 + $0x70] sm:$0xff]  ;;  %v234_v6 = vld [vmem:[%s838_s1 + $0x68] sm:$0xff]  ;;  %vm326_vm2 = vcmask 261120  }
  0x16   : > { %446 = vmatpush3.msra.mxu0 %v236_v1  ;;  %s436_s18 = sshll.u32 %s198_s7, 3  ;;  %v249_v7 = vld [vmem:[%s838_s1 + $0xe0] sm:$0xff]  ;;  %v248_v10 = vld [vmem:[%s838_s1 + $0xd8] sm:$0xff]  ;;  %v247_v12 = vld [vmem:[%s838_s1 + $0xd0] sm:$0xff]  ;;  %v210_v35 = vand.u32 127, %v209_v34 }
  0x17   : > { %447 = vmatprep.subr.mxu0 %v251_v2  ;;  %s203_s27 = scalar_lea.vmem %s837_s0, %s436_s18  ;;  %v233_v8 = vld [vmem:[%s838_s1 + $0x60] sm:$0xff]  ;;  %v232_v11 = vld [vmem:[%s838_s1 + $0x58] sm:$0xff]  ;;  %v231_v13 = vld [vmem:[%s838_s1 + $0x50] sm:$0xff]  ;;  %s618_s18 = smov [#allocation2]  }
  0x18   : > { %448 = vmatpush3.msra.mxu0 %v235_v4  ;;  %v208_v9 = vld [vmem:[%s203_s27] sm:$0xff]  ;;  %v246_v14 = vld [vmem:[%s838_s1 + $0xc8] sm:$0xff]  ;;  %v244_v18 = vld [vmem:[%s838_s1 + $0xb8] sm:$0xff]  ;;  %v211_v36 = vadd.s32 128, %v210_v35  ;;  %s194_s27 = sand.u32 1, %s598_s13   ;;  %s542_s19 = sshll.u32 %s618_s18, 4  ;;  %s543_s19 = int_to_ptr.vmem [resolvable:$false] %s542_s19 }
  0x19   : > { %449 = vmatprep.subr.mxu0 %v250_v5  ;;  %213 = vperm.xlu0 %537, %v208_v9   ;;  %v230_v15 = vld [vmem:[%s838_s1 + $0x48] sm:$0xff]  ;;  %v245_v16 = vld [vmem:[%s838_s1 + $0xc0] sm:$0xff]  ;;  %v228_v19 = vld [vmem:[%s838_s1 + $0x38] sm:$0xff]  ;;  %s435_s28 = sshll.u32 %s194_s27, 3  ;;  %s329_s10 = scalar_lea.sflag [#allocation3], %s194_s27 }
  0x1a   : > { %450 = vmatpush3.msra.mxu0 %v234_v6  ;;  %v229_v17 = vld [vmem:[%s838_s1 + $0x40] sm:$0xff]  ;;  %v243_v20 = vld [vmem:[%s838_s1 + $0xb0] sm:$0xff]  ;;  %v242_v22 = vld [vmem:[%s838_s1 + $0xa8] sm:$0xff]  ;;  %s196_s5 = scalar_lea.vmem [#allocation2], %s435_s28  ;;  %s544_s15 = scalar_lea.vmem %s543_s19, 256 }
  0x1b   : > { %451 = vmatprep.subr.mxu0 %v249_v7  ;;  %v227_v21 = vld [vmem:[%s838_s1 + $0x30] sm:$0xff]  ;;  %v226_v23 = vld [vmem:[%s838_s1 + $0x28] sm:$0xff]  ;;  %v241_v24 = vld [vmem:[%s838_s1 + $0xa0] sm:$0xff]  ;;  %s343_s6 = sshll.u32 %s196_s5, 4  ;;  %s344_s6 = int_to_ptr.vmem [resolvable:$true] %s343_s6 }
  0x1c   : > { %452 = vmatpush3.msra.mxu0 %v233_v8  ;;  %v225_v25 = vld [vmem:[%s838_s1 + $0x20] sm:$0xff]  ;;  %v240_v26 = vld [vmem:[%s838_s1 + $0x98] sm:$0xff]  ;;  %v239_v28 = vld [vmem:[%s838_s1 + $0x90] sm:$0xff]  ;;  %s538_s11 = scalar_lea.vmem %s344_s6, 128  ;;  %p545_p1 = scmp.lt.s32.totalorder %s344_s6, %s543_s19 }
  0x1d   : > { %453 = vmatprep.subr.mxu0 %v248_v10  ;;  %v224_v27 = vld [vmem:[%s838_s1 + $0x18] sm:$0xff]  ;;  %v223_v29 = vld [vmem:[%s838_s1 + $0x10] sm:$0xff]  ;;  %v238_v30 = vld [vmem:[%s838_s1 + $0x88] sm:$0xff]  ;;  %p539_p12 = scmp.ne.s32.totalorder %s344_s6, %s538_s11  ;;  %p546_p2 = scmp.lt.s32.totalorder %s544_s15, %s538_s11 }
  0x1e   : > { %454 = vmatpush3.msra.mxu0 %v232_v11  ;;  %v222_v31 = vld [vmem:[%s838_s1 + $0x8] sm:$0xff]  ;;  %v237_v32 = vld [vmem:[%s838_s1 + $0x80] sm:$0xff] }
  0x1f   : > { %455 = vmatprep.subr.mxu0 %v247_v12  ;;  %v221_v33 = vld [vmem:[%s838_s1] sm:$0xff]  ;;  %p540_p13 = pnand %p539_p12, %p679_p4  ;;  %p547_p3 = por %p546_p2, %p545_p1 }
  0x20   : > { %456 = vmatpush3.msra.mxu0 %v231_v13  ;;  %v324_v42 = vld [vmem:[%s839_s2] sm:$0xff] }
  0x21   : > { %457 = vmatprep.subr.mxu0 %v246_v14  ;;  %p541_p0 = pneg %p540_p13 }
  0x22   : > { %458 = vmatpush3.msra.mxu0 %v230_v15 }
  0x23   : > { %459 = vmatprep.subr.mxu0 %v245_v16  ;;  %p548_p5 = pnand %p547_p3, %p541_p0 }
  0x24   : > { %460 = vmatpush3.msra.mxu0 %v229_v17 }
  0x25   : > { %461 = vmatprep.subr.mxu0 %v244_v18 }
  0x26   : > { %462 = vmatpush3.msra.mxu0 %v228_v19 }
  0x27   : > { %463 = vmatprep.subr.mxu0 %v243_v20 }
  0x28   : > { %464 = vmatpush3.msra.mxu0 %v227_v21 }
  0x29   : > { %465 = vmatprep.subr.mxu0 %v242_v22 }
  0x2a   : > { %466 = vmatpush3.msra.mxu0 %v226_v23 }
  0x2b   : > { %467 = vmatprep.subr.mxu0 %v241_v24 }
  0x2c   : > { %468 = vmatpush3.msra.mxu0 %v225_v25 }
  0x2d   : > { %469 = vmatprep.subr.mxu0 %v240_v26 }
  0x2e   : > { %470 = vmatpush3.msra.mxu0 %v224_v27 }
  0x2f   : > { %471 = vmatprep.subr.mxu0 %v239_v28 }
  0x30   : > { %472 = vmatpush3.msra.mxu0 %v223_v29 }
  0x31   : > { %473 = vmatprep.subr.mxu0 %v238_v30 }
  0x32   : > { %474 = vmatpush3.msra.mxu0 %v222_v31 }
  0x33   : > { %475 = vmatprep.subr.mxu0 %v237_v32 }
  0x34   : > { %476 = vmatpush3.msra.mxu0 %v221_v33 }
  0x94   : > { %v214_v37 = vpop.permute.xlu0 %213 }
  0x95   : > { %vm215_vm0 = vcmp.eq.s32.totalorder %v210_v35, %v214_v37  ;;  %vm216_vm1 = vcmp.eq.s32.totalorder %v211_v36, %v214_v37 }
  0x96   : > { %439 = vmatprep.mubr.msk.f32.mxu0 %vm216_vm1, %v617_v38 }
  0x97   : > { %440 = vmatmul.mubr.msk.f32.vlgmr.msra.gmra.mxu0 %vm215_vm0, %v617_v38 }
 0x157   : > { %v477_v39 = vpop.f32.mrf.mxu0 }
 0x159   : > { %v478_v40 = vpop.f32.mrf.mxu0 }
 0x15a   : > { %v479_v41 = vadd.f32 %v478_v40, %v477_v39 }
 0x15c   : > { %v323_v43 = vmul.f32 5.656854, %v479_v41 }
 0x15e   : > { %v325_v44 = vadd.f32 %v324_v42, %v323_v43 }
 0x160   : > { %327 = vst.msk [vmem:[%s196_s5] sm:$0xff] %vm326_vm2, %v325_v44 }
 0x161   : > { %551 = shalt.err (!%p548_p5)
}
 0x162   : > { %s552_s21 = scalar_lea.hbm %s341_s9, 128  ;;  %s556_s27 = scalar_lea.hbm %s840_s3, 256 }
 0x163   : > { %p553_p6 = scmp.ne.s32.totalorder %s341_s9, %s552_s21  ;;  %p557_p10 = scmp.lt.s32.totalorder %s341_s9, %s840_s3 }
 0x164   : > { %p558_p11 = scmp.lt.s32.totalorder %s556_s27, %s552_s21 }
 0x165   : > { %p554_p7 = pnand %p553_p6, %p679_p4 }
 0x166   : > { %p559_p12 = por %p558_p11, %p557_p10 }
 0x167   : > { %p555_p9 = pneg %p554_p7 }
 0x169   : > { %p560_p13 = pnand %p559_p12, %p555_p9 }
 0x16b   : > { %563 = shalt.err (!%p560_p13)
}
 0x16c   : > { %480 = dma.vmem_to_hbm [thread:$0]  (%p679_p4), %s344_s6, 128, %s341_s9, %s329_s10  }
 0x16d PF: > { %p486_p0 = scmp.ge.s32.totalorder %s614_s17, 2  ;;  %s355_s30 = sand.u32 1, %s594_s12  }
 0x16e   : > { %s356_s4 = scalar_lea.sflag [#allocation3], %s355_s30 }
 0x16f   : > { %p483_p1 = pnand %p486_p0, %p686_p8 }
 0x171   : > { %p484_p2 = pneg %p483_p1 }
 0x173   : > { %589 = dma.done.wait (%p484_p2), %s356_s4, 128  }
 0x174   : > { %591 = vsyncadd (%p484_p2), %s356_s4, 4294967168  ;;  %s16_s17 = sadd.s32 1, %s614_s17   ;;  %s843_s12 = smov %s598_s13 }
 0x175   : > { %p13_p3 = scmp.ge.s32.totalorder %s16_s17, 4   ;;  %s844_s13 = smov %s602_s14 }
 0x176   : > { %s845_s14 = smov %s692_s25  ;;  %s846_s15 = smov %s610_s16 }
 0x177   : > { %s847_s16 = smov %s849_s20  ;;  %15 = sbr.rel (!%p13_p3) target bundleno = 4 (0x4), region = 70 }
 0x17c   :  { %361 = vsyncpa [#allocation3], 1 }
 0x17d   :  { %363 = vsyncpa [#allocation3 + $0x1], 1 }

</bundles_post_ra>
